<compile_context>
chip_gen: v7x
topology: tpu7x:2x2x1
jax: 0.10.0
libtpu: 0.0.40
codegen_flags: <defaults>
</compile_context>

<pallas_src>
import jax
import jax.numpy as jnp
from jax.experimental import pallas as pl
from jax.experimental.pallas import tpu as pltpu

LEAKY_SLOPE = 0.01   # torch.nn.LeakyReLU default negative_slope
F_IN = 49            # 1*7*7 flattened input
HIDDEN = 128


def _round_up(n, m):
    return ((n + m - 1) // m) * m


def discriminator_kernel(x_ref,
                         w1_ref, b1_ref,
                         w2_ref, b2_ref,
                         w3_ref, b3_ref,
                         w4_ref, b4_ref,
                         o_ref):
    # x tile: (tb, 49) f32; w1/w2/w3/w4: bf16; b1..b3: epilogue dtype; b4: f32.
    ep = b1_ref.dtype                      # f32 (v5e and older) or bf16 (v6e/v7x)
    x = x_ref[...].astype(jnp.bfloat16)    # cast in-kernel; no wrapper HBM pass

    def layer(inp_bf16, w_ref, b_ref):
        acc = jnp.dot(inp_bf16, w_ref[...], preferred_element_type=jnp.float32)
        h = acc.astype(ep) + b_ref[...]
        h = jnp.maximum(h, LEAKY_SLOPE * h)          # max-form LeakyReLU (2 VPU ops)
        return h.astype(jnp.bfloat16)

    h = layer(x, w1_ref, b1_ref)
    h = layer(h, w2_ref, b2_ref)
    h = layer(h, w3_ref, b3_ref)

    # Final Linear(128 -> 1) as (1,128) @ (tb,128)^T -> (1, tb): lane-dense row,
    # negligible MXU cost (M=1), no (tb,1) column relayout needed.
    logit = jax.lax.dot_general(
        w4_ref[...], h,
        dimension_numbers=(((1,), (1,)), ((), ())),
        preferred_element_type=jnp.float32) + b4_ref[...]          # (1, tb)

    # Sigmoid on the EUP via tanh (numerically safe for large |logit|).
    o_ref[...] = (0.5 * jnp.tanh(0.5 * logit) + 0.5).astype(o_ref.dtype)


def discriminator_forward(x_nchw, params, *, block_b=4096):
    """x_nchw: (B, C, H, W) with C*H*W == 49.  Returns (B, 1) float32."""
    B = x_nchw.shape[0]
    (w1, b1), (w2, b2), (w3, b3), (w4, b4) = params

    x2d = x_nchw.reshape(B, -1).astype(jnp.float32)   # torch.flatten(x, 1)
    assert x2d.shape[1] == F_IN

    # Epilogue dtype: bf16 where the VALU is bf16-capable (v6e / v7x), else f32.
    kind = jax.devices()[0].device_kind.lower()
    bf16_epilogue = ("v6" in kind) or ("v7" in kind) or ("7x" in kind)
    ep_dtype = jnp.bfloat16 if bf16_epilogue else jnp.float32

    # Batch tiling: single tile for small batches, otherwise >=2 lane-aligned
    # tiles (engages both TensorCores on v7x) capped at block_b.
    tb_full = _round_up(B, 8)
    if tb_full <= block_b and tb_full <= 1024:
        tb = tb_full
    else:
        blk = max(128, (block_b // 128) * 128)
        tb = min(blk, max(128, _round_up(pl.cdiv(tb_full, 2), 128)))
    n_tiles = pl.cdiv(B, tb)
    Bp = n_tiles * tb

    # Only a (tiny / often no-op) batch pad — no feature pad, no wrapper cast.
    x_in = x2d if Bp == B else jnp.pad(x2d, ((0, Bp - B), (0, 0)))

    # Weights in (in, out) layout so the kernel computes x @ W + b.
    w1b = w1.astype(jnp.bfloat16)                          # (49, 128)
    w2b = w2.astype(jnp.bfloat16)                          # (128, 128)
    w3b = w3.astype(jnp.bfloat16)                          # (128, 128)
    w4r = w4.reshape(1, HIDDEN).astype(jnp.bfloat16)       # (1, 128)
    b1r = b1.reshape(1, HIDDEN).astype(ep_dtype)
    b2r = b2.reshape(1, HIDDEN).astype(ep_dtype)
    b3r = b3.reshape(1, HIDDEN).astype(ep_dtype)
    b4r = b4.reshape(1, 1).astype(jnp.float32)

    const = lambda shape: pl.BlockSpec(shape, lambda i: (0, 0))  # VMEM-resident

    out_row = pl.pallas_call(
        discriminator_kernel,
        out_shape=jax.ShapeDtypeStruct((1, Bp), jnp.float32),
        grid=(n_tiles,),
        in_specs=[
            pl.BlockSpec((tb, F_IN), lambda i: (i, 0)),    # x tile (pipelined)
            const((F_IN, HIDDEN)), const((1, HIDDEN)),     # fc_1
            const((HIDDEN, HIDDEN)), const((1, HIDDEN)),   # fc_2
            const((HIDDEN, HIDDEN)), const((1, HIDDEN)),   # fc_3
            const((1, HIDDEN)), const((1, 1)),             # fc_4 row + bias
        ],
        out_specs=pl.BlockSpec((1, tb), lambda i: (0, i)),  # lane-dense output
        compiler_params=pltpu.CompilerParams(
            dimension_semantics=("parallel",),
            vmem_limit_bytes=40 * 1024 * 1024),
    )(x_in, w1b, b1r, w2b, b2r, w3b, b3r, w4r, b4r)

    return out_row[0, :B].reshape(B, 1)


def init_params(key):
    """torch.nn.Linear-style init; weights stored transposed (in, out), f32."""
    dims = [(F_IN, HIDDEN), (HIDDEN, HIDDEN), (HIDDEN, HIDDEN), (HIDDEN, 1)]
    params = []
    for (fan_in, fan_out) in dims:
        key, kw, kb = jax.random.split(key, 3)
        bound = 1.0 / jnp.sqrt(jnp.float32(fan_in))
        w = jax.random.uniform(kw, (fan_in, fan_out), jnp.float32, -bound, bound)
        b = jax.random.uniform(kb, (1, fan_out), jnp.float32, -bound, bound)
        params.append((w, b))
    return params


def reference_forward(x_nchw, params):
    """Pure-JAX f32 reference for sanity checking."""
    x = x_nchw.reshape(x_nchw.shape[0], -1).astype(jnp.float32)
    (w1, b1), (w2, b2), (w3, b3), (w4, b4) = params
    h = jax.nn.leaky_relu(x @ w1 + b1, LEAKY_SLOPE)
    h = jax.nn.leaky_relu(h @ w2 + b2, LEAKY_SLOPE)
    h = jax.nn.leaky_relu(h @ w3 + b3, LEAKY_SLOPE)
    return jax.nn.sigmoid(h @ w4 + b4)


if __name__ == "__main__":
    key = jax.random.PRNGKey(0)
    key, kx = jax.random.split(key)

    # Input implied by fc_1 = Linear(49, 128): a (B, 1, 7, 7) image.
    x = jax.random.normal(kx, (2, 1, 7, 7), jnp.float32)

    params = init_params(key)

    out = discriminator_forward(x, params)
    out = jax.block_until_ready(out)

    ref = reference_forward(x, params)
    assert out.shape == (2, 1)
    # bf16 matmul inputs (+ bf16 epilogue on v6e/v7x) -> loose tolerance.
    assert jnp.allclose(out, ref, atol=2e-2, rtol=2e-2), (out, ref)

    print("KERNEL_OK")
</pallas_src>

<mosaic_0001>
module attributes {stable_mosaic.version = 11 : i64} {
  func.func @discriminator_kernel(%arg0: i32, %arg1: memref<8x49xf32, #tpu.memory_space<vmem>>, %arg2: memref<49x128xbf16, #tpu.memory_space<vmem>>, %arg3: memref<1x128xf32, #tpu.memory_space<vmem>>, %arg4: memref<128x128xbf16, #tpu.memory_space<vmem>>, %arg5: memref<1x128xf32, #tpu.memory_space<vmem>>, %arg6: memref<128x128xbf16, #tpu.memory_space<vmem>>, %arg7: memref<1x128xf32, #tpu.memory_space<vmem>>, %arg8: memref<1x128xbf16, #tpu.memory_space<vmem>>, %arg9: memref<1x1xf32, #tpu.memory_space<vmem>>, %arg10: memref<1x8xf32, #tpu.memory_space<vmem>>) attributes {dimension_semantics = [#tpu.dimension_semantics<parallel>], iteration_bounds = array<i64: 1>, scalar_prefetch = 0 : i64, scratch_operands = 0 : i64, tpu.core_type = #tpu.core_type<tc>, window_params = [{transform_indices = @transform_0, window_bounds = array<i64: 8, 49>}, {pipeline_mode = #tpu.pipeline_mode<synchronous>, transform_indices = @transform_1, window_bounds = array<i64: 49, 128>}, {pipeline_mode = #tpu.pipeline_mode<synchronous>, transform_indices = @transform_2, window_bounds = array<i64: 1, 128>}, {pipeline_mode = #tpu.pipeline_mode<synchronous>, transform_indices = @transform_3, window_bounds = array<i64: 128, 128>}, {pipeline_mode = #tpu.pipeline_mode<synchronous>, transform_indices = @transform_4, window_bounds = array<i64: 1, 128>}, {pipeline_mode = #tpu.pipeline_mode<synchronous>, transform_indices = @transform_5, window_bounds = array<i64: 128, 128>}, {pipeline_mode = #tpu.pipeline_mode<synchronous>, transform_indices = @transform_6, window_bounds = array<i64: 1, 128>}, {pipeline_mode = #tpu.pipeline_mode<synchronous>, transform_indices = @transform_7, window_bounds = array<i64: 1, 128>}, {pipeline_mode = #tpu.pipeline_mode<synchronous>, transform_indices = @transform_8, window_bounds = array<i64: 1, 1>}, {transform_indices = @transform_9, window_bounds = array<i64: 1, 8>}]} {
    %c0 = arith.constant 0 : index
    %c0_0 = arith.constant 0 : index
    %0 = vector.load %arg1[%c0, %c0_0] : memref<8x49xf32, #tpu.memory_space<vmem>>, vector<8x49xf32>
    %1 = arith.truncf %0 : vector<8x49xf32> to vector<8x49xbf16>
    %c0_1 = arith.constant 0 : index
    %c0_2 = arith.constant 0 : index
    %2 = vector.load %arg2[%c0_1, %c0_2] : memref<49x128xbf16, #tpu.memory_space<vmem>>, vector<49x128xbf16>
    %cst = arith.constant dense<0.000000e+00> : vector<8x128xf32>
    %3 = tpu.matmul %1, %2, %cst {dimension_numbers = #tpu.dot_dimension_numbers<[1], [0], [0], [1], [0, 0, 1, 1], [], []>} : vector<8x49xbf16>, vector<49x128xbf16>, vector<8x128xf32> -> vector<8x128xf32>
    %c0_3 = arith.constant 0 : index
    %c0_4 = arith.constant 0 : index
    %4 = vector.load %arg3[%c0_3, %c0_4] : memref<1x128xf32, #tpu.memory_space<vmem>>, vector<1x128xf32>
    %5 = vector.broadcast %4 : vector<1x128xf32> to vector<8x128xf32>
    %6 = arith.addf %3, %5 : vector<8x128xf32>
    %cst_5 = arith.constant 0.00999999977 : f32
    %7 = vector.broadcast %cst_5 : f32 to vector<8x128xf32>
    %8 = arith.mulf %7, %6 : vector<8x128xf32>
    %9 = arith.maximumf %6, %8 : vector<8x128xf32>
    %10 = arith.truncf %9 : vector<8x128xf32> to vector<8x128xbf16>
    %c0_6 = arith.constant 0 : index
    %c0_7 = arith.constant 0 : index
    %11 = vector.load %arg4[%c0_6, %c0_7] : memref<128x128xbf16, #tpu.memory_space<vmem>>, vector<128x128xbf16>
    %cst_8 = arith.constant dense<0.000000e+00> : vector<8x128xf32>
    %12 = tpu.matmul %10, %11, %cst_8 {dimension_numbers = #tpu.dot_dimension_numbers<[1], [0], [0], [1], [0, 0, 1, 1], [], []>} : vector<8x128xbf16>, vector<128x128xbf16>, vector<8x128xf32> -> vector<8x128xf32>
    %c0_9 = arith.constant 0 : index
    %c0_10 = arith.constant 0 : index
    %13 = vector.load %arg5[%c0_9, %c0_10] : memref<1x128xf32, #tpu.memory_space<vmem>>, vector<1x128xf32>
    %14 = vector.broadcast %13 : vector<1x128xf32> to vector<8x128xf32>
    %15 = arith.addf %12, %14 : vector<8x128xf32>
    %cst_11 = arith.constant 0.00999999977 : f32
    %16 = vector.broadcast %cst_11 : f32 to vector<8x128xf32>
    %17 = arith.mulf %16, %15 : vector<8x128xf32>
    %18 = arith.maximumf %15, %17 : vector<8x128xf32>
    %19 = arith.truncf %18 : vector<8x128xf32> to vector<8x128xbf16>
    %c0_12 = arith.constant 0 : index
    %c0_13 = arith.constant 0 : index
    %20 = vector.load %arg6[%c0_12, %c0_13] : memref<128x128xbf16, #tpu.memory_space<vmem>>, vector<128x128xbf16>
    %cst_14 = arith.constant dense<0.000000e+00> : vector<8x128xf32>
    %21 = tpu.matmul %19, %20, %cst_14 {dimension_numbers = #tpu.dot_dimension_numbers<[1], [0], [0], [1], [0, 0, 1, 1], [], []>} : vector<8x128xbf16>, vector<128x128xbf16>, vector<8x128xf32> -> vector<8x128xf32>
    %c0_15 = arith.constant 0 : index
    %c0_16 = arith.constant 0 : index
    %22 = vector.load %arg7[%c0_15, %c0_16] : memref<1x128xf32, #tpu.memory_space<vmem>>, vector<1x128xf32>
    %23 = vector.broadcast %22 : vector<1x128xf32> to vector<8x128xf32>
    %24 = arith.addf %21, %23 : vector<8x128xf32>
    %cst_17 = arith.constant 0.00999999977 : f32
    %25 = vector.broadcast %cst_17 : f32 to vector<8x128xf32>
    %26 = arith.mulf %25, %24 : vector<8x128xf32>
    %27 = arith.maximumf %24, %26 : vector<8x128xf32>
    %28 = arith.truncf %27 : vector<8x128xf32> to vector<8x128xbf16>
    %c0_18 = arith.constant 0 : index
    %c0_19 = arith.constant 0 : index
    %29 = vector.load %arg8[%c0_18, %c0_19] : memref<1x128xbf16, #tpu.memory_space<vmem>>, vector<1x128xbf16>
    %cst_20 = arith.constant dense<0.000000e+00> : vector<1x8xf32>
    %30 = tpu.matmul %29, %28, %cst_20 {dimension_numbers = #tpu.dot_dimension_numbers<[1], [1], [0], [0], [0, 0, 1, 0], [], []>} : vector<1x128xbf16>, vector<8x128xbf16>, vector<1x8xf32> -> vector<1x8xf32>
    %c0_21 = arith.constant 0 : index
    %c0_22 = arith.constant 0 : index
    %31 = vector.load %arg9[%c0_21, %c0_22] : memref<1x1xf32, #tpu.memory_space<vmem>>, vector<1x1xf32>
    %32 = vector.broadcast %31 : vector<1x1xf32> to vector<1x8xf32>
    %33 = arith.addf %30, %32 : vector<1x8xf32>
    %cst_23 = arith.constant 5.000000e-01 : f32
    %34 = vector.broadcast %cst_23 : f32 to vector<1x8xf32>
    %35 = arith.mulf %34, %33 : vector<1x8xf32>
    %36 = math.tanh %35 : vector<1x8xf32>
    %cst_24 = arith.constant 5.000000e-01 : f32
    %37 = vector.broadcast %cst_24 : f32 to vector<1x8xf32>
    %38 = arith.mulf %37, %36 : vector<1x8xf32>
    %cst_25 = arith.constant 5.000000e-01 : f32
    %39 = vector.broadcast %cst_25 : f32 to vector<1x8xf32>
    %40 = arith.addf %38, %39 : vector<1x8xf32>
    %c0_26 = arith.constant 0 : index
    %c0_27 = arith.constant 0 : index
    %41 = vector.load %arg10[%c0_26, %c0_27] : memref<1x8xf32, #tpu.memory_space<vmem>>, vector<1x8xf32>
    tpu.vector_store %arg10[%c0_26, %c0_27], %40 {strides = array<i32>} : memref<1x8xf32, #tpu.memory_space<vmem>>, vector<1x8xf32>,
    return
  }
  func.func @transform_0(%arg0: i32) -> (i32, i32) {
    %c0_i32 = arith.constant 0 : i32
    %c0_i32_0 = arith.constant 0 : i32
    return %arg0, %c0_i32 : i32, i32
  }
  func.func @transform_1(%arg0: i32) -> (i32, i32) {
    %c0_i32 = arith.constant 0 : i32
    %c0_i32_0 = arith.constant 0 : i32
    %c0_i32_1 = arith.constant 0 : i32
    return %c0_i32, %c0_i32_0 : i32, i32
  }
  func.func @transform_2(%arg0: i32) -> (i32, i32) {
    %c0_i32 = arith.constant 0 : i32
    %c0_i32_0 = arith.constant 0 : i32
    %c0_i32_1 = arith.constant 0 : i32
    return %c0_i32, %c0_i32_0 : i32, i32
  }
  func.func @transform_3(%arg0: i32) -> (i32, i32) {
    %c0_i32 = arith.constant 0 : i32
    %c0_i32_0 = arith.constant 0 : i32
    %c0_i32_1 = arith.constant 0 : i32
    return %c0_i32, %c0_i32_0 : i32, i32
  }
  func.func @transform_4(%arg0: i32) -> (i32, i32) {
    %c0_i32 = arith.constant 0 : i32
    %c0_i32_0 = arith.constant 0 : i32
    %c0_i32_1 = arith.constant 0 : i32
    return %c0_i32, %c0_i32_0 : i32, i32
  }
  func.func @transform_5(%arg0: i32) -> (i32, i32) {
    %c0_i32 = arith.constant 0 : i32
    %c0_i32_0 = arith.constant 0 : i32
    %c0_i32_1 = arith.constant 0 : i32
    return %c0_i32, %c0_i32_0 : i32, i32
  }
  func.func @transform_6(%arg0: i32) -> (i32, i32) {
    %c0_i32 = arith.constant 0 : i32
    %c0_i32_0 = arith.constant 0 : i32
    %c0_i32_1 = arith.constant 0 : i32
    return %c0_i32, %c0_i32_0 : i32, i32
  }
  func.func @transform_7(%arg0: i32) -> (i32, i32) {
    %c0_i32 = arith.constant 0 : i32
    %c0_i32_0 = arith.constant 0 : i32
    %c0_i32_1 = arith.constant 0 : i32
    return %c0_i32, %c0_i32_0 : i32, i32
  }
  func.func @transform_8(%arg0: i32) -> (i32, i32) {
    %c0_i32 = arith.constant 0 : i32
    %c0_i32_0 = arith.constant 0 : i32
    %c0_i32_1 = arith.constant 0 : i32
    return %c0_i32, %c0_i32_0 : i32, i32
  }
  func.func @transform_9(%arg0: i32) -> (i32, i32) {
    %c0_i32 = arith.constant 0 : i32
    %c0_i32_0 = arith.constant 0 : i32
    return %c0_i32, %arg0 : i32, i32
  }
}

</mosaic_0001>

<bundles_post_ra>
// kernel: tpu_custom_call.1
= control target key start
LH: loop header
LB: loop body
LE: loop exit
PB: predicated region body
PF: predicated region fallthrough
CT: control target
= control target key end

     0   :  { %s912_s0 = inlined_call_operand.hbm [shape: f32[8,49], index: 0, kind: input, shape index: {}]   ;;  %s913_s1 = inlined_call_operand.hbm [shape: bf16[49,128], index: 1, kind: input, shape index: {}]   ;;  %s914_s2 = inlined_call_operand.vmem [shape: f32[1,128], index: 2, kind: input, shape index: {}]   ;;  %s915_s3 = inlined_call_operand.hbm [shape: bf16[128,128], index: 3, kind: input, shape index: {}]   ;;  %s916_s4 = inlined_call_operand.vmem [shape: f32[1,128], index: 4, kind: input, shape index: {}]   ;;  %s917_s5 = inlined_call_operand.hbm [shape: bf16[128,128], index: 5, kind: input, shape index: {}]   ;;  %s918_s6 = inlined_call_operand.vmem [shape: f32[1,128], index: 6, kind: input, shape index: {}]   ;;  %s919_s7 = inlined_call_operand.vmem [shape: bf16[1,128], index: 7, kind: input, shape index: {}]   ;;  %s920_s8 = inlined_call_operand.<no memory space> [shape: f32[1,1], index: 8, kind: input, shape index: {}]   ;;  %s921_s9 = inlined_call_operand.hbm [shape: f32[1,8], index: 9, kind: output, shape index: {}]  }
   0x1   :  { %v14_v0 = vstv %s920_s8 }
   0x2   :  { %15 = vst [vmem:[#allocation2] sm:$0x1] %v14_v0 }
   0x3   :  { %16 = vsyncpa [#allocation4], 0 }
   0x4   :  { %17 = vsyncpa [#allocation7], 0 }
   0x5   :  { %18 = vsyncpa [#allocation10], 0 }
   0x6   :  { %19 = vsyncpa [#allocation5], 0  ;;  %s739_s11 = smov [#allocation6]   ;;  %s621_s15 = scalar_lea.hbm %s913_s1, 448 }
   0x7   :  { %s35_s12 = sshll.u32 %s739_s11, 4  ;;  %p622_p0 = scmp.ne.s32.totalorder %s913_s1, %s621_s15  ;;  %s36_s12 = int_to_ptr.vmem [resolvable:$true] %s35_s12 }
   0x8   :  { %p625_p1 = scmp.lt.u32.totalorder %s621_s15, %s913_s1 }
   0xa   :  { %p627_p2 = pnand %p625_p1, %p622_p0 }
   0xc   :  { %630 = shalt.err (!%p627_p2)
}
   0xd   :  { %s631_s8 = scalar_lea.vmem %s36_s12, 448  ;;  %p636_p4 = scmp.lt.s32.totalorder %s36_s12, %s36_s12 }
   0xe   :  { %p632_p3 = scmp.ne.s32.totalorder %s36_s12, %s631_s8  ;;  %p637_p5 = scmp.lt.s32.totalorder %s631_s8, %s631_s8 }
  0x10   :  { %p638_p6 = por %p637_p5, %p636_p4 }
  0x12   :  { %p639_p7 = pnand %p638_p6, %p632_p3 }
  0x14   :  { %642 = shalt.err (!%p639_p7)
}
  0x15   :  { %s740_s20 = smov 64   ;;  %s741_s21 = smov 4  }
  0x16   :  { %41 = dma.hbm_to_vmem [thread:$0]  %s913_s1, 448, %s36_s12, [#allocation7], %s740_s20, %s740_s20, %s741_s21  }
  0x17   :  { %s742_s24 = smov [#allocation3]   ;;  %s743_s26 = smov [#allocation8]  }
  0x18   :  { %s26_s25 = sshll.u32 %s742_s24, 4  ;;  %s49_s27 = sshll.u32 %s743_s26, 4  ;;  %s27_s25 = int_to_ptr.vmem [resolvable:$true] %s26_s25  ;;  %s50_s27 = int_to_ptr.vmem [resolvable:$true] %s49_s27 }
  0x19   :  { %s643_s30 = scalar_lea.hbm %s912_s0, 128 }
  0x1a   :  { %p644_p8 = scmp.ne.s32.totalorder %s912_s0, %s643_s30  ;;  %p647_p9 = scmp.lt.u32.totalorder %s643_s30, %s912_s0 }
  0x1c   :  { %p649_p10 = pnand %p647_p9, %p644_p8 }
  0x1e   :  { %652 = shalt.err (!%p649_p10)
}
  0x1f   :  { %s653_s1 = scalar_lea.vmem %s27_s25, 128  ;;  %p658_p12 = scmp.lt.s32.totalorder %s27_s25, %s27_s25 }
  0x20   :  { %p654_p11 = scmp.ne.s32.totalorder %s27_s25, %s653_s1  ;;  %p659_p13 = scmp.lt.s32.totalorder %s653_s1, %s653_s1 }
  0x22   :  { %p660_p0 = por %p659_p13, %p658_p12 }
  0x24   :  { %p661_p1 = pnand %p660_p0, %p654_p11 }
  0x26   :  { %664 = shalt.err (!%p661_p1)
}
  0x27   :  { %29 = dma.hbm_to_vmem [thread:$0]  %s912_s0, 128, %s27_s25, [#allocation4]  }
  0x28   :  { %s665_s18 = scalar_lea.hbm %s915_s3, 1024 }
  0x29   :  { %p666_p2 = scmp.ne.s32.totalorder %s915_s3, %s665_s18  ;;  %p669_p3 = scmp.lt.u32.totalorder %s665_s18, %s915_s3 }
  0x2b   :  { %p671_p4 = pnand %p669_p3, %p666_p2 }
  0x2d   :  { %674 = shalt.err (!%p671_p4)
}
  0x2e   :  { %s675_s24 = scalar_lea.vmem %s50_s27, 1024  ;;  %p680_p6 = scmp.lt.s32.totalorder %s50_s27, %s50_s27 }
  0x2f   :  { %p676_p5 = scmp.ne.s32.totalorder %s50_s27, %s675_s24  ;;  %p681_p7 = scmp.lt.s32.totalorder %s675_s24, %s675_s24 }
  0x31   :  { %p682_p8 = por %p681_p7, %p680_p6 }
  0x33   :  { %p683_p9 = pnand %p682_p8, %p676_p5 }
  0x35   :  { %686 = shalt.err (!%p683_p9)
}
  0x36   :  { %55 = dma.hbm_to_vmem [thread:$0]  %s915_s3, 1024, %s50_s27, [#allocation7], %s740_s20, %s740_s20, %s741_s21  }
  0x37   :  { %s744_s26 = smov [#allocation9]   ;;  %s687_s10 = scalar_lea.hbm %s917_s5, 1024 }
  0x38   :  { %s63_s28 = sshll.u32 %s744_s26, 4  ;;  %p688_p10 = scmp.ne.s32.totalorder %s917_s5, %s687_s10  ;;  %s64_s28 = int_to_ptr.vmem [resolvable:$true] %s63_s28 }
  0x39   :  { %p691_p11 = scmp.lt.u32.totalorder %s687_s10, %s917_s5 }
  0x3b   :  { %p693_p12 = pnand %p691_p11, %p688_p10 }
  0x3d   :  { %696 = shalt.err (!%p693_p12)
}
  0x3e   :  { %s697_s12 = scalar_lea.vmem %s64_s28, 1024  ;;  %p702_p0 = scmp.lt.s32.totalorder %s64_s28, %s64_s28 }
  0x3f   :  { %p698_p13 = scmp.ne.s32.totalorder %s64_s28, %s697_s12  ;;  %p703_p1 = scmp.lt.s32.totalorder %s697_s12, %s697_s12 }
  0x41   :  { %p704_p2 = por %p703_p1, %p702_p0 }
  0x43   :  { %p705_p3 = pnand %p704_p2, %p698_p13 }
  0x45   :  { %708 = shalt.err (!%p705_p3)
}
  0x46   :  { %69 = dma.hbm_to_vmem [thread:$0]  %s917_s5, 1024, %s64_s28, [#allocation10], %s740_s20, %s740_s20, %s741_s21  }
  0x47   :  { %731 = dma.done.wait [#allocation4], 128  }
  0x48   :  { %732 = vsyncadd [#allocation4], 4294967168 }
  0x49   :  { %733 = dma.done.wait [#allocation7], 1472  }
  0x4a   :  { %734 = vsyncadd [#allocation7], 4294965824 }
  0x4b   :  { %735 = dma.done.wait [#allocation10], 1024  }
  0x4c   :  { %736 = vsyncadd [#allocation10], 4294966272  ;;  %v745_v1 = vmov 0.0   ;;  %vm746_vm0 = vmmov 0   ;;  %v747_v2 = vmov 0   ;;  %v599_v3 = vld [vmem:[#allocation6] sm:$0xff]   ;;  %v414_v56 = vlaneseq }
  0x4d   :  { %530 = vmatprep.subr.bf16.mxu0 %v745_v1  ;;  %538 = vmatprep.mubr.msk.bf16.mxu0 %vm746_vm0, %v745_v1  ;;  %v600_v4 = vld [vmem:[#allocation6 + $0x8] sm:$0xff]   ;;  %v602_v5 = vld [vmem:[#allocation6 + $0x18] ss:$0 sps:$4 sm:$0x11]   ;;  %vm130_vm1 = vcmask 1040384   ;;  %v603_v6 = vld [vmem:[#allocation8] sm:$0xff]  }
  0x4e   :  { %542 = vmatprep.subr.bf16.mxu1 %v745_v1  ;;  %558 = vmatprep.mubr.msk.bf16.mxu1 %vm746_vm0, %v745_v1  ;;  %v601_v7 = vld [vmem:[#allocation6 + $0x10] sm:$0xff]   ;;  %v604_v8 = vld [vmem:[#allocation8 + $0x8] sm:$0xff]   ;;  %v132_v9 = vsel %vm130_vm1, 65535, %v747_v2  ;;  %v89_v10 = vld [vmem:[#allocation3] sm:$0xff]  ;;  %vm126_vm2 = vcmask 400384   ;;  %v415_v57 = vshrl.u32 %v414_v56, 7 }
  0x4f   :  { %598 = vset.pattern.permute.xlu0 %v747_v2  ;;  %531 = vmatpush3.bf16.msra.mxu0 %v599_v3  ;;  %v134_v11 = vand.u32 %v602_v5, %v132_v9  ;;  %v605_v12 = vld [vmem:[#allocation8 + $0x10] sm:$0xff]   ;;  %v606_v13 = vld [vmem:[#allocation8 + $0x18] sm:$0xff]   ;;  %v90_v14 = vpack.c.bf16 %v89_v10, %v89_v10  ;;  %v607_v15 = vld [vmem:[#allocation8 + $0x20] sm:$0xff]   ;;  %vm462_vm3 = vcmask 57344  }
  0x50   :  { %532 = vmatprep.subr.bf16.mxu0 %v745_v1  ;;  %543 = vmatpush3.bf16.msra.mxu1 %v603_v6  ;;  %v608_v16 = vld [vmem:[#allocation8 + $0x28] sm:$0xff]   ;;  %v609_v17 = vld [vmem:[#allocation8 + $0x30] sm:$0xff]   ;;  %v610_v18 = vld [vmem:[#allocation8 + $0x38] sm:$0xff]   ;;  %v416_v58 = vsub.s32 0, %v415_v57 }
  0x51   :  { %544 = vmatprep.subr.bf16.mxu1 %v745_v1  ;;  %v611_v19 = vld [vmem:[#allocation9] sm:$0xff]   ;;  %v612_v20 = vld [vmem:[#allocation9 + $0x8] sm:$0xff]   ;;  %v613_v21 = vld [vmem:[#allocation9 + $0x10] sm:$0xff]  }
  0x52   :  { %v614_v22 = vld [vmem:[#allocation9 + $0x18] sm:$0xff]   ;;  %v615_v23 = vld [vmem:[#allocation9 + $0x20] sm:$0xff]   ;;  %v616_v24 = vld [vmem:[#allocation9 + $0x28] sm:$0xff]  }
  0x53   :  { %533 = vmatpush3.bf16.msra.mxu0 %v600_v4  ;;  %v481_v25 = vld [vmem:[%s914_s2] ss:$0 sm:$0xff]  ;;  %v617_v34 = vld [vmem:[#allocation9 + $0x30] sm:$0xff]  }
  0x54   :  { %534 = vmatprep.subr.bf16.mxu0 %v745_v1  ;;  %545 = vmatpush3.bf16.msra.mxu1 %v604_v8  ;;  %v618_v35 = vld [vmem:[#allocation9 + $0x38] sm:$0xff]  }
  0x55   :  { %546 = vmatprep.subr.bf16.mxu1 %v745_v1  ;;  %v487_v36 = vld [vmem:[%s916_s4] ss:$0 sm:$0xff] }
  0x56   :  { %v408_v45 = vld [vmem:[#allocation2] sm:$0x1] }
  0x57   :  { %535 = vmatpush3.bf16.msra.mxu0 %v601_v7  ;;  %411 = vperm.xlu0 %598, %v408_v45   ;;  %v496_v46 = vld [vmem:[%s918_s6] ss:$0 sm:$0xff]  ;;  %s748_s6 = smov [#allocation11]  }
  0x58   :  { %536 = vmatprep.subr.bf16.mxu0 %v745_v1  ;;  %547 = vmatpush3.bf16.msra.mxu1 %v605_v12  ;;  %v407_v55 = vld [vmem:[%s919_s7] sm:$0x1]  ;;  %s470_s18 = sshll.u32 %s748_s6, 4  ;;  %s471_s18 = int_to_ptr.vmem [resolvable:$true] %s470_s18 }
  0x59   :  { %548 = vmatprep.subr.bf16.mxu1 %v745_v1  ;;  %s709_s7 = scalar_lea.vmem %s471_s18, 16  ;;  %s713_s19 = scalar_lea.vmem %s471_s18, 32 }
  0x5a   :  { %p710_p4 = scmp.ne.s32.totalorder %s471_s18, %s709_s7  ;;  %p714_p5 = scmp.lt.s32.totalorder %s471_s18, %s471_s18 }
  0x5b   :  { %537 = vmatpush3.bf16.msra.mxu0 %v134_v11  ;;  %p715_p6 = scmp.lt.s32.totalorder %s713_s19, %s709_s7 }
  0x5c   :  { %562 = vmatprep.subr.bf16.mxu0 %v745_v1  ;;  %549 = vmatpush3.bf16.msra.mxu1 %v606_v13 }
  0x5d   :  { %550 = vmatprep.subr.bf16.mxu1 %v745_v1  ;;  %p716_p7 = por %p715_p6, %p714_p5 }
  0x5e   :  { %539 = vmatmul.mubr.msk.bf16.vlgmr.msra.gmra.mrb[0].mxu0 %vm126_vm2, %v90_v14 }
  0x5f   :  { %578 = vmatprep.mubr.msk.bf16.mxu0 %vm746_vm0, %v745_v1  ;;  %563 = vmatpush3.bf16.msra.mxu0 %v611_v19  ;;  %p717_p8 = pnand %p716_p7, %p710_p4 }
  0x60   :  { %551 = vmatpush3.bf16.msra.mxu1 %v607_v15  ;;  %564 = vmatprep.subr.bf16.mxu0 %v745_v1 }
  0x61   :  { %552 = vmatprep.subr.bf16.mxu1 %v745_v1 }
  0x63   :  { %565 = vmatpush3.bf16.msra.mxu0 %v612_v20 }
  0x64   :  { %553 = vmatpush3.bf16.msra.mxu1 %v608_v16  ;;  %566 = vmatprep.subr.bf16.mxu0 %v745_v1 }
  0x65   :  { %554 = vmatprep.subr.bf16.mxu1 %v745_v1 }
  0x67   :  { %567 = vmatpush3.bf16.msra.mxu0 %v613_v21 }
  0x68   :  { %555 = vmatpush3.bf16.msra.mxu1 %v609_v17  ;;  %568 = vmatprep.subr.bf16.mxu0 %v745_v1 }
  0x69   :  { %556 = vmatprep.subr.bf16.mxu1 %v745_v1 }
  0x6b   :  { %569 = vmatpush3.bf16.msra.mxu0 %v614_v22 }
  0x6c   :  { %557 = vmatpush3.bf16.msra.mxu1 %v610_v18  ;;  %570 = vmatprep.subr.bf16.mxu0 %v745_v1 }
  0x6d   :  { %582 = vmatprep.subr.bf16.mxu1 %v745_v1 }
  0x6f   :  { %571 = vmatpush3.bf16.msra.mxu0 %v615_v23 }
  0x70   :  { %572 = vmatprep.subr.bf16.mxu0 %v745_v1 }
  0x73   :  { %573 = vmatpush3.bf16.msra.mxu0 %v616_v24 }
  0x74   :  { %574 = vmatprep.subr.bf16.mxu0 %v745_v1 }
  0x77   :  { %575 = vmatpush3.bf16.msra.mxu0 %v617_v34 }
  0x78   :  { %576 = vmatprep.subr.bf16.mxu0 %v745_v1 }
  0x7b   :  { %577 = vmatpush3.bf16.msra.mxu0 %v618_v35 }
  0xd6   :  { %v412_v59 = vpop.permute.xlu0 %411 }
  0xd7   :  { %v417_v60 = vrot.slane %v412_v59, %v416_v58 }
 0x131   :  { %v170_v26 = vpop.f32.mrb[0].mxu0 }
 0x132   :  { %v171_v27 = vadd.f32 %v481_v25, %v170_v26  ;;  %v540_v28 = vpop.f32.mrb[1].mxu0 }
 0x133   :  { %v173_v29 = vpop.f32.mrb[2].mxu0 }
 0x134   :  { %v176_v30 = vmul.f32 0.01, %v171_v27  ;;  %v541_v31 = vpop.f32.mrb[3].mxu0 }
 0x136   :  { %v177_v32 = vmax.f32 %v171_v27, %v176_v30 }
 0x138   :  { %v178_v33 = vpack.c.bf16 %v177_v32, %v177_v32 }
 0x13a   :  { %559 = vmatmul.mubr.bf16.vlgmr.msra.gmra.mrb[0].mxu1 %v178_v33 }
 0x13b   :  { %584 = vmatprep.mubr.msk.bf16.mxu1 %vm746_vm0, %v745_v1 }
 0x20d   :  { %v284_v37 = vpop.f32.mrb[0].mxu1 }
 0x20e   :  { %v285_v38 = vadd.f32 %v487_v36, %v284_v37  ;;  %v560_v39 = vpop.f32.mrb[1].mxu1 }
 0x20f   :  { %v287_v40 = vpop.f32.mrb[2].mxu1 }
 0x210   :  { %v290_v41 = vmul.f32 0.01, %v285_v38  ;;  %v561_v42 = vpop.f32.mrb[3].mxu1 }
 0x212   :  { %v291_v43 = vmax.f32 %v285_v38, %v290_v41 }
 0x214   :  { %v292_v44 = vpack.c.bf16 %v291_v43, %v291_v43 }
 0x216   :  { %579 = vmatmul.mubr.bf16.vlgmr.msra.gmra.mrb[4].mxu0 %v292_v44 }
 0x2e9   :  { %v398_v47 = vpop.f32.mrb[4].mxu0 }
 0x2ea   :  { %v399_v48 = vadd.f32 %v496_v46, %v398_v47  ;;  %v580_v49 = vpop.f32.mrb[5].mxu0 }
 0x2eb   :  { %v401_v50 = vpop.f32.mrb[6].mxu0 }
 0x2ec   :  { %v404_v51 = vmul.f32 0.01, %v399_v48  ;;  %v581_v52 = vpop.f32.mrb[7].mxu0 }
 0x2ee   :  { %v405_v53 = vmax.f32 %v399_v48, %v404_v51 }
 0x2f0   :  { %v406_v54 = vpack.c.bf16 %v405_v53, %v405_v53 }
 0x2f2   :  { %583 = vmatpush3.bf16.xpose.msra.mxu1 %v406_v54 }
 0x2f9   :  { %585 = vmatmul.mubr.bf16.vlgmr.msra.gmra.mrb[4].mxu1 %v407_v55 }
 0x3cc   :  { %v452_v61 = vpop.f32.mrb[4].mxu1 }
 0x3cd   :  { %v453_v62 = vadd.f32 %v452_v61, %v417_v60  ;;  %v586_v63 = vpop.f32.mrb[5].mxu1 }
 0x3ce   :  { %v455_v0 = vpop.f32.mrb[6].mxu1 }
 0x3cf   :  { %v458_v1 = vmul.f32 0.5, %v453_v62  ;;  %v587_v2 = vpop.f32.mrb[7].mxu1 }
 0x3d1   :  { %619 = vtanh.f32 %v458_v1 }
 0x3db   :  { %v620_v3 = vpop.eup %619 }
 0x3dc   :  { %v460_v4 = vmul.f32 0.5, %v620_v3 }
 0x3de   :  { %v461_v5 = vadd.f32 0.5, %v460_v4 }
 0x3e0   :  { %463 = vst.msk [vmem:[#allocation11] sm:$0x1] %vm462_vm3, %v461_v5 }
 0x3e1   :  { %720 = shalt.err (!%p717_p8)
}
 0x3e2   :  { %s721_s23 = scalar_lea.hbm %s921_s9, 16 }
 0x3e3   :  { %p722_p9 = scmp.ne.s32.totalorder %s921_s9, %s721_s23  ;;  %p725_p10 = scmp.lt.u32.totalorder %s721_s23, %s921_s9 }
 0x3e5   :  { %p727_p11 = pnand %p725_p10, %p722_p9 }
 0x3e7   :  { %730 = shalt.err (!%p727_p11)
}
 0x3e8   :  { %473 = dma.vmem_to_hbm [thread:$0]  %s471_s18, 16, %s921_s9, [#allocation5]  }
 0x3e9   :  { %737 = dma.done.wait [#allocation5], 16  }
 0x3ea   :  { %738 = vsyncadd [#allocation5], 4294967280 }
 0x3eb   :  { %477 = vsyncpa [#allocation4], 1 }
 0x3ec   :  { %478 = vsyncpa [#allocation7], 1 }
 0x3ed   :  { %479 = vsyncpa [#allocation10], 1 }
 0x3ee   :  { %480 = vsyncpa [#allocation5], 1 }

</bundles_post_ra>
